<compile_context>
chip_gen: v5e
topology: v5e:2x2
jax: 0.10.0
libtpu: 0.0.40
codegen_flags: <defaults>
</compile_context>

<pallas_src>
import jax
import jax.numpy as jnp
from jax.experimental import pallas as pl
from jax.experimental.pallas import tpu as pltpu


def _pick_tile(n, granule, target):
    """Largest divisor of n that is a multiple of `granule` and <= target.
    n is always padded to a multiple of `granule` by the wrapper, so the
    full-extent fallback below is unreachable in practice."""
    if n <= target:
        return n
    t = target - (target % granule)
    while t >= granule:
        if n % t == 0:
            return t
        t -= granule
    return n


def gcn_layer(node_feats, adj_matrix, weight, bias):
    """node_feats: (B, N, c_in), adj_matrix: (B, N, N) of 0/1,
    weight: (c_out, c_in), bias: (c_out,).  Returns (B, N, c_out)."""
    B, N, c_in = node_feats.shape
    c_out = weight.shape[0]
    out_dtype = node_feats.dtype
    c_aug = c_in + 1                      # extra ones-column carries the degree

    # ---- wrapper-side prep (cheap relative to the B*N*N adjacency stream) ----
    # Append ones column: (adj @ [x | 1]) gives [adj@x | deg] in one matmul.
    ones = jnp.ones((B, N, 1), dtype=node_feats.dtype)
    x_aug = jnp.concatenate([node_feats, ones], axis=-1)

    # Pad node count to a multiple of 128 (zero rows/cols: padded rows get
    # deg=0 -> clamped; padded outputs are sliced off at the end).
    N_pad = ((N + 127) // 128) * 128
    pad = N_pad - N

    # bf16 streams: adj values are exactly 0/1 (lossless); x is the only
    # lossy cast.  Cast before padding so the pad copy is half-width too.
    adj_bf = adj_matrix.astype(jnp.bfloat16)
    x_bf = x_aug.astype(jnp.bfloat16)
    if pad:
        adj_bf = jnp.pad(adj_bf, ((0, 0), (0, pad), (0, pad)))
        x_bf = jnp.pad(x_bf, ((0, 0), (0, pad), (0, 0)))

    wt = weight.T.astype(jnp.float32)                 # (c_in, c_out), resident
    bias2d = bias.reshape(1, c_out).astype(jnp.float32)

    # ---- tiling ----
    TM = _pick_tile(N_pad, 8, 512)
    TK = _pick_tile(N_pad, 128, 2048)
    n_m = N_pad // TM
    n_k = N_pad // TK

    def kernel(adj_ref, x_ref, wt_ref, b_ref, o_ref, acc_ref):
        # adj_ref: (1, TM, TK)        bf16 adjacency tile (dominant HBM stream)
        # x_ref:   (1, N_pad, c_aug)  bf16 [x | 1], resident per batch
        # wt_ref:  (c_in, c_out)      f32 W^T, resident
        # b_ref:   (1, c_out)         f32 bias, resident
        # o_ref:   (1, TM, c_out)     output tile, resident across K axis
        # acc_ref: (TM, c_aug)        f32 accumulator; col c_in holds the degree
        k = pl.program_id(2)

        @pl.when(k == 0)
        def _():
            acc_ref[...] = jnp.zeros_like(acc_ref)

        start = pl.multiple_of(k * TK, 128)
        x_k = x_ref[0, pl.ds(start, TK), :]                  # (TK, c_aug)
        acc_ref[...] += jnp.dot(adj_ref[0], x_k,
                                preferred_element_type=jnp.float32)

        @pl.when(k == pl.num_programs(2) - 1)
        def _():
            acc = acc_ref[...]                               # (TM, c_aug) f32
            agg = acc[:, :c_in]                              # adj @ x
            deg = acc[:, c_in:]                              # adj @ 1 = degree
            inv = pl.reciprocal(jnp.maximum(deg, 1.0), approx=True)
            out = jnp.dot(agg * inv, wt_ref[...],
                          preferred_element_type=jnp.float32) + b_ref[...]
            o_ref[0] = out.astype(o_ref.dtype)

    # ---- explicit scoped-VMEM budget (double-buffered tiles + scratch) ----
    out_isize = jnp.dtype(out_dtype).itemsize
    vmem_needed = (2 * TM * TK * 2                 # adj tiles (bf16, 2 bufs)
                   + 2 * N_pad * c_aug * 2         # resident x (2 bufs)
                   + 2 * TM * c_out * out_isize    # output tiles
                   + 2 * c_in * c_out * 4 + 2 * c_out * 4   # W^T + bias
                   + TM * c_aug * 4)               # accumulator scratch
    vmem_limit = int(min(max(vmem_needed + (4 << 20), 32 << 20), 48 << 20))

    cost = pl.CostEstimate(
        flops=2 * B * N_pad * N_pad * c_aug + 2 * B * N_pad * c_in * c_out,
        transcendentals=B * N_pad,
        bytes_accessed=(B * N_pad * N_pad * 2          # adj (bf16)
                        + B * N_pad * c_aug * 2        # x (bf16)
                        + B * N_pad * c_out * out_isize))

    out = pl.pallas_call(
        kernel,
        out_shape=jax.ShapeDtypeStruct((B, N_pad, c_out), out_dtype),
        grid_spec=pltpu.PrefetchScalarGridSpec(
            num_scalar_prefetch=0,
            grid=(B, n_m, n_k),
            in_specs=[
                pl.BlockSpec((1, TM, TK), lambda b, m, k: (b, m, k)),        # adj tile
                pl.BlockSpec((1, N_pad, c_aug), lambda b, m, k: (b, 0, 0)),  # x resident
                pl.BlockSpec((c_in, c_out), lambda b, m, k: (0, 0)),         # W^T resident
                pl.BlockSpec((1, c_out), lambda b, m, k: (0, 0)),            # bias resident
            ],
            out_specs=pl.BlockSpec((1, TM, c_out), lambda b, m, k: (b, m, 0)),
            scratch_shapes=[pltpu.VMEM((TM, c_aug), jnp.float32)],
        ),
        compiler_params=pltpu.CompilerParams(
            dimension_semantics=("parallel", "parallel", "arbitrary"),
            vmem_limit_bytes=vmem_limit),
        cost_estimate=cost,
    )(adj_bf, x_bf, wt, bias2d)

    return out[:, :N, :] if pad else out


if __name__ == "__main__":
    B, N, C_IN, C_OUT = 2, 256, 16, 32

    key = jax.random.PRNGKey(0)
    k_x, k_adj, k_w, k_b = jax.random.split(key, 4)

    node_feats = jax.random.normal(k_x, (B, N, C_IN), dtype=jnp.float32)

    # Random directed adjacency with self-loops (as the module assumes).
    adj = (jax.random.uniform(k_adj, (B, N, N)) > 0.5).astype(jnp.float32)
    adj = jnp.maximum(adj, jnp.eye(N, dtype=jnp.float32)[None, :, :])

    # nn.Linear-style parameters: weight [c_out, c_in], bias [c_out].
    bound = 1.0 / (C_IN ** 0.5)
    weight = jax.random.uniform(k_w, (C_OUT, C_IN), minval=-bound, maxval=bound,
                                dtype=jnp.float32)
    bias = jax.random.uniform(k_b, (C_OUT,), minval=-bound, maxval=bound,
                              dtype=jnp.float32)

    out = gcn_layer(node_feats, adj, weight, bias)
    jax.block_until_ready(out)

    # Reference in module order (f32).  Tolerance reflects bf16 x stream and
    # the approximate EUP reciprocal.
    proj_ref = node_feats @ weight.T + bias
    ref = (adj @ proj_ref) / jnp.sum(adj, axis=-1, keepdims=True)
    assert out.shape == ref.shape
    assert jnp.allclose(out, ref, atol=1e-2, rtol=1e-2), (
        f"mismatch vs reference, max abs err {jnp.max(jnp.abs(out - ref))}")

    # Second check: node count not a multiple of 128 exercises the padding path.
    N2 = 200
    nf2 = jax.random.normal(k_x, (B, N2, C_IN), dtype=jnp.float32)
    adj2 = (jax.random.uniform(k_adj, (B, N2, N2)) > 0.5).astype(jnp.float32)
    adj2 = jnp.maximum(adj2, jnp.eye(N2, dtype=jnp.float32)[None, :, :])
    out2 = gcn_layer(nf2, adj2, weight, bias)
    jax.block_until_ready(out2)
    proj2 = nf2 @ weight.T + bias
    ref2 = (adj2 @ proj2) / jnp.sum(adj2, axis=-1, keepdims=True)
    assert jnp.allclose(out2, ref2, atol=1e-2, rtol=1e-2), (
        f"padded-path mismatch, max abs err {jnp.max(jnp.abs(out2 - ref2))}")

    print("KERNEL_OK")
</pallas_src>

<mosaic_0001>
module attributes {stable_mosaic.version = 11 : i64} {
  func.func @kernel(%arg0: i32, %arg1: i32, %arg2: i32, %arg3: memref<1x256x256xbf16, #tpu.memory_space<vmem>>, %arg4: memref<1x256x17xbf16, #tpu.memory_space<vmem>>, %arg5: memref<16x32xf32, #tpu.memory_space<vmem>>, %arg6: memref<1x32xf32, #tpu.memory_space<vmem>>, %arg7: memref<1x256x32xf32, #tpu.memory_space<vmem>>, %arg8: memref<256x17xf32, #tpu.memory_space<vmem>>) attributes {dimension_semantics = [#tpu.dimension_semantics<parallel>, #tpu.dimension_semantics<parallel>, #tpu.dimension_semantics<arbitrary>], iteration_bounds = array<i64: 2, 1, 1>, scalar_prefetch = 0 : i64, scratch_operands = 1 : i64, tpu.core_type = #tpu.core_type<tc>, window_params = [{transform_indices = @transform_0, window_bounds = array<i64: 1, 256, 256>}, {transform_indices = @transform_1, window_bounds = array<i64: 1, 256, 17>}, {pipeline_mode = #tpu.pipeline_mode<synchronous>, transform_indices = @transform_2, window_bounds = array<i64: 16, 32>}, {pipeline_mode = #tpu.pipeline_mode<synchronous>, transform_indices = @transform_3, window_bounds = array<i64: 1, 32>}, {transform_indices = @transform_4, window_bounds = array<i64: 1, 256, 32>}]} {
    %c0_i32 = arith.constant 0 : i32
    %0 = arith.cmpi eq, %arg2, %c0_i32 : i32
    %1 = arith.extui %0 : i1 to i32
    %c0_i32_0 = arith.constant 0 : i32
    %2 = arith.cmpi ne, %1, %c0_i32_0 : i32
    scf.if %2 {
      %cst_11 = arith.constant 0.000000e+00 : f32
      %17 = vector.broadcast %cst_11 : f32 to vector<256x17xf32>
      %c0_12 = arith.constant 0 : index
      %c0_13 = arith.constant 0 : index
      %18 = vector.load %arg8[%c0_12, %c0_13] : memref<256x17xf32, #tpu.memory_space<vmem>>, vector<256x17xf32>
      tpu.vector_store %arg8[%c0_12, %c0_13], %17 {strides = array<i32>} : memref<256x17xf32, #tpu.memory_space<vmem>>, vector<256x17xf32>,
    } else {
    }
    %c256_i32 = arith.constant 256 : i32
    %3 = arith.muli %arg2, %c256_i32 : i32
    %4 = tpu.assume_multiple %3, 128 : i32
    %c0 = arith.constant 0 : index
    %5 = arith.index_cast %4 : i32 to index
    %c0_1 = arith.constant 0 : index
    %6 = vector.load %arg4[%c0, %5, %c0_1] : memref<1x256x17xbf16, #tpu.memory_space<vmem>>, vector<1x256x17xbf16>
    %7 = vector.shape_cast %6 : vector<1x256x17xbf16> to vector<256x17xbf16>
    %c0_2 = arith.constant 0 : index
    %c0_3 = arith.constant 0 : index
    %8 = vector.load %arg8[%c0_2, %c0_3] : memref<256x17xf32, #tpu.memory_space<vmem>>, vector<256x17xf32>
    %c0_4 = arith.constant 0 : index
    %c0_5 = arith.constant 0 : index
    %c0_6 = arith.constant 0 : index
    %9 = vector.load %arg3[%c0_4, %c0_5, %c0_6] : memref<1x256x256xbf16, #tpu.memory_space<vmem>>, vector<1x256x256xbf16>
    %10 = vector.shape_cast %9 : vector<1x256x256xbf16> to vector<256x256xbf16>
    %cst = arith.constant dense<0.000000e+00> : vector<256x17xf32>
    %11 = tpu.matmul %10, %7, %cst {dimension_numbers = #tpu.dot_dimension_numbers<[1], [0], [0], [1], [0, 0, 1, 1], [], []>} : vector<256x256xbf16>, vector<256x17xbf16>, vector<256x17xf32> -> vector<256x17xf32>
    %12 = arith.addf %8, %11 : vector<256x17xf32>
    %c0_7 = arith.constant 0 : index
    %c0_8 = arith.constant 0 : index
    %13 = vector.load %arg8[%c0_7, %c0_8] : memref<256x17xf32, #tpu.memory_space<vmem>>, vector<256x17xf32>
    tpu.vector_store %arg8[%c0_7, %c0_8], %12 {strides = array<i32>} : memref<256x17xf32, #tpu.memory_space<vmem>>, vector<256x17xf32>,
    %c0_i32_9 = arith.constant 0 : i32
    %14 = arith.cmpi eq, %arg2, %c0_i32_9 : i32
    %15 = arith.extui %14 : i1 to i32
    %c0_i32_10 = arith.constant 0 : i32
    %16 = arith.cmpi ne, %15, %c0_i32_10 : i32
    scf.if %16 {
      %c0_11 = arith.constant 0 : index
      %c0_12 = arith.constant 0 : index
      %17 = vector.load %arg8[%c0_11, %c0_12] : memref<256x17xf32, #tpu.memory_space<vmem>>, vector<256x17xf32>
      %18 = vector.extract_strided_slice %17 {offsets = [0, 0], sizes = [256, 16], strides = [1, 1]} : vector<256x17xf32> to vector<256x16xf32>
      %19 = vector.extract_strided_slice %17 {offsets = [0, 16], sizes = [256, 1], strides = [1, 1]} : vector<256x17xf32> to vector<256x1xf32>
      %cst_13 = arith.constant 1.000000e+00 : f32
      %20 = vector.broadcast %cst_13 : f32 to vector<256x1xf32>
      %21 = arith.maximumf %19, %20 : vector<256x1xf32>
      %22 = tpu.reciprocal %21 {approx = true} : vector<256x1xf32> -> vector<256x1xf32>
      %23 = vector.broadcast %22 : vector<256x1xf32> to vector<256x16xf32>
      %24 = arith.mulf %18, %23 : vector<256x16xf32>
      %c0_14 = arith.constant 0 : index
      %c0_15 = arith.constant 0 : index
      %25 = vector.load %arg5[%c0_14, %c0_15] : memref<16x32xf32, #tpu.memory_space<vmem>>, vector<16x32xf32>
      %cst_16 = arith.constant dense<0.000000e+00> : vector<256x32xf32>
      %26 = tpu.matmul %24, %25, %cst_16 {dimension_numbers = #tpu.dot_dimension_numbers<[1], [0], [0], [1], [0, 0, 1, 1], [], []>} : vector<256x16xf32>, vector<16x32xf32>, vector<256x32xf32> -> vector<256x32xf32>
      %c0_17 = arith.constant 0 : index
      %c0_18 = arith.constant 0 : index
      %27 = vector.load %arg6[%c0_17, %c0_18] : memref<1x32xf32, #tpu.memory_space<vmem>>, vector<1x32xf32>
      %28 = vector.broadcast %27 : vector<1x32xf32> to vector<256x32xf32>
      %29 = arith.addf %26, %28 : vector<256x32xf32>
      %c0_19 = arith.constant 0 : index
      %c0_20 = arith.constant 0 : index
      %c0_21 = arith.constant 0 : index
      %30 = vector.load %arg7[%c0_19, %c0_20, %c0_21] : memref<1x256x32xf32, #tpu.memory_space<vmem>>, vector<1x256x32xf32>
      %31 = vector.shape_cast %30 : vector<1x256x32xf32> to vector<256x32xf32>
      %32 = vector.shape_cast %29 : vector<256x32xf32> to vector<1x256x32xf32>
      tpu.vector_store %arg7[%c0_19, %c0_20, %c0_21], %32 {strides = array<i32>} : memref<1x256x32xf32, #tpu.memory_space<vmem>>, vector<1x256x32xf32>,
    } else {
    }
    return
  }
  func.func @transform_0(%arg0: i32, %arg1: i32, %arg2: i32) -> (i32, i32, i32) {
    %c0_i32 = arith.constant 0 : i32
    return %arg0, %arg1, %arg2 : i32, i32, i32
  }
  func.func @transform_1(%arg0: i32, %arg1: i32, %arg2: i32) -> (i32, i32, i32) {
    %c0_i32 = arith.constant 0 : i32
    %c0_i32_0 = arith.constant 0 : i32
    %c0_i32_1 = arith.constant 0 : i32
    return %arg0, %c0_i32, %c0_i32_0 : i32, i32, i32
  }
  func.func @transform_2(%arg0: i32, %arg1: i32, %arg2: i32) -> (i32, i32) {
    %c0_i32 = arith.constant 0 : i32
    %c0_i32_0 = arith.constant 0 : i32
    %c0_i32_1 = arith.constant 0 : i32
    return %c0_i32, %c0_i32_0 : i32, i32
  }
  func.func @transform_3(%arg0: i32, %arg1: i32, %arg2: i32) -> (i32, i32) {
    %c0_i32 = arith.constant 0 : i32
    %c0_i32_0 = arith.constant 0 : i32
    %c0_i32_1 = arith.constant 0 : i32
    return %c0_i32, %c0_i32_0 : i32, i32
  }
  func.func @transform_4(%arg0: i32, %arg1: i32, %arg2: i32) -> (i32, i32, i32) {
    %c0_i32 = arith.constant 0 : i32
    %c0_i32_0 = arith.constant 0 : i32
    return %arg0, %arg1, %c0_i32 : i32, i32, i32
  }
}

</mosaic_0001>

<bundles_post_ra>
// kernel: tpu_custom_call.1
= control target key start
LH: loop header
LB: loop body
LE: loop exit
PB: predicated region body
PF: predicated region fallthrough
CT: control target
= control target key end

     0   :  { %9 = vsyncpa [#allocation4], 0  ;;  %s2654_s0 = inlined_call_operand.hbm [shape: bf16[2,256,256], index: 0, kind: input, shape index: {}]   ;;  %s2655_s1 = inlined_call_operand.vmem [shape: bf16[2,256,17], index: 1, kind: input, shape index: {}]   ;;  %s2656_s2 = inlined_call_operand.vmem [shape: f32[16,32], index: 2, kind: input, shape index: {}]   ;;  %s2657_s3 = inlined_call_operand.vmem [shape: f32[1,32], index: 3, kind: input, shape index: {}]   ;;  %s2658_s4 = inlined_call_operand.vmem [shape: f32[2,256,32], index: 4, kind: output, shape index: {}]  }
   0x1   :  { %11 = vsyncpa [#allocation4 + $0x1], 0  ;;  %s2118_s15 = smov 0   ;;  %s2120_s16 = smov 0  }
   0x2   :  { %s2122_s17 = smov 0   ;;  %s2124_s18 = smov 0  }
   0x3   :  { %s2126_s19 = smov 0   ;;  %s2128_s20 = smov 0  }
   0x4 LB: > { %s1572_s21 = sadd.s32 4294967295, %s2087_s20   ;;  %s36_s22 = sadd.s32 1, %s2083_s19  ;;  %s2087_s20 = sphi %s2128_s20, %s17_s20   ;;  %s2083_s19 = sphi %s2126_s19, %s2665_s19   ;;  %s2079_s18 = sphi %s2124_s18, %s2664_s18   ;;  %s2075_s17 = sphi %s2122_s17, %s2663_s17   ;;  %s2071_s16 = sphi %s2120_s16, %s2662_s16   ;;  %s2067_s15 = sphi %s2118_s15, %s2661_s15  }
   0x5   : > { %p38_p0 = scmp.ge.s32.totalorder %s36_s22, 2  ;;  %s47_s23 = sadd.s32 1, %s2075_s17 }
   0x6   : > { %p54_p1 = scmp.ne.s32.totalorder %s2075_s17, %s2071_s16  ;;  %p55_p2 = scmp.eq.s32.totalorder %s2087_s20, 0 }
   0x7   : > { %s2667_s22 = smov (%p38_p0, %s36_s22), 0  ;;  %p60_p4 = scmp.ne.s32.totalorder %s2071_s16, %s2067_s15 }
   0x8   : > { %p2154_p3 = por %p55_p2, %p54_p1  ;;  %s40_s25 = ssub.s32 %s2083_s19, %s2667_s22 }
   0x9   : > { %p61_p5 = scmp.eq.s32.totalorder %s1572_s21, 0  ;;  %p45_p6 = scmp.eq.s32.totalorder %s40_s25, 0 }
   0xa   : > { %p1886_p8 = scmp.lt.s32.totalorder %s2087_s20, 2  ;;  %s186_s28 = sand.u32 1, %s2075_s17  }
   0xb   : > { %p2161_p7 = por %p61_p5, %p60_p4  ;;  %s1811_s29 = sshll.u32 %s2083_s19, 8 }
   0xc   : > { %s2167_s27 = scalar_select %p45_p6, %s2075_s17, %s47_s23  }
   0xd   : > { %s1576_s30 = sshll.u32 %s186_s28, 8  ;;  %s200_s7 = scalar_lea.hbm %s2654_s0, %s1811_s29 }
   0xe   : > { %s201_s8 = sshll.u32 %s200_s7, 4  ;;  %s190_s9 = scalar_lea.vmem [#allocation3], %s1576_s30  ;;  %s202_s8 = int_to_ptr.hbm [resolvable:$true] %s201_s8 }
   0xf   : > { %s203_s10 = sshll.u32 %s190_s9, 4  ;;  %p1883_p9 = pnand %p1886_p8, %p2154_p3  ;;  %s204_s10 = int_to_ptr.vmem [resolvable:$true] %s203_s10 }
  0x10   : > { %p1579_p10 = scmp.ge.s32.totalorder %s2087_s20, 1  ;;  %p219_p11 = scmp.lt.s32.totalorder %s2087_s20, 3 }
  0x11   : > { %s187_s11 = scalar_lea.sflag [#allocation4], %s186_s28  ;;  %s2089_s12 = smov 128  }
  0x12   : > { %s2090_s13 = smov 8   ;;  %p220_p12 = pnand %p1579_p10, %p219_p11 }
  0x13   : > { %1885 = dma.hbm_to_vmem [thread:$0]  (!%p1883_p9), %s202_s8, 4096, %s204_s10, %s187_s11, %s2089_s12, %s2089_s12, %s2090_s13  }
  0x14   : > { %223 = sbr.rel (%p220_p12) target bundleno = 673 (0x2a1), region = 36  ;;  %s225_s14 = sand.u32 (!%p220_p12), 1, %s2071_s16  }
  0x15   : > { %s1580_s15 = sshll.u32 (!%p220_p12), %s225_s14, 8  ;;  %s226_s21 = scalar_lea.sflag (!%p220_p12), [#allocation4], %s225_s14 }
  0x16   : > { %s2179_s23 = scalar_lea.vmem (!%p220_p12), [#allocation3], %s1580_s15 }
  0x19   : > { %2062 = dma.done.wait (%p2161_p7), %s226_s21, 4096  }
  0x1a   : > { %2064 = vsyncadd (%p2161_p7), %s226_s21, 4294963200  ;;  %p266_p13 = scmp.lt.s32.totalorder %s2079_s18, 1  ;;  %v1587_v16 = vld [vmem:[%s2179_s23] sm:$0xf]  ;;  %v1831_v17 = vld [vmem:[%s2179_s23 + $0x4] sm:$0xf0] }
  0x1b   : > { %v1830_v18 = vld [vmem:[%s2179_s23 + $0x4] sm:$0xf]  ;;  %v1589_v19 = vld [vmem:[%s2179_s23 + $0x8] sm:$0xf0]  ;;  %v1683_v20 = vld [vmem:[%s2179_s23 + $0xc0] sm:$0xf]  ;;  %v1588_v22 = vor.u32 %v1831_v17, %v1587_v16 }
  0x1c   : > { %s2669_s18 = smov (!%p266_p13, %s2079_s18), 1  ;;  %v1855_v21 = vld [vmem:[%s2179_s23 + $0xc4] sm:$0xf0]  ;;  %v1592_v23 = vor.u32 %v1830_v18, %v1589_v19  ;;  %v1595_v25 = vld [vmem:[%s2179_s23 + $0x10] sm:$0xf]  ;;  %vm285_vm0 = vcmask 138240  }
  0x1d   : > { %s1812_s24 = sshll.u32 %s2669_s18, 7  ;;  %v1684_v24 = vor.u32 %v1855_v21, %v1683_v20  ;;  %v1833_v26 = vld [vmem:[%s2179_s23 + $0x14] sm:$0xf0]  ;;  %v1832_v27 = vld [vmem:[%s2179_s23 + $0x14] sm:$0xf]  ;;  %vm1215_vm1 = vcmask 130048  }
  0x1e   : > { %s2193_s29 = scalar_lea.vmem %s2655_s1, %s1812_s24  ;;  %v1597_v28 = vld [vmem:[%s2179_s23 + $0x18] sm:$0xf0]  ;;  %v1691_v29 = vld [vmem:[%s2179_s23 + $0xd0] sm:$0xf]  ;;  %v1857_v30 = vld [vmem:[%s2179_s23 + $0xd4] sm:$0xf0]  ;;  %v1596_v31 = vor.u32 %v1833_v26, %v1595_v25 }
  0x1f   : > { %v1821_v0 = vld [vmem:[%s2193_s29 + $0x38] sm:$0xff]  ;;  %v1820_v2 = vld [vmem:[%s2193_s29 + $0x30] sm:$0xff]  ;;  %v1819_v4 = vld [vmem:[%s2193_s29 + $0x28] sm:$0xff]  ;;  %v1600_v32 = vor.u32 %v1832_v27, %v1597_v28  ;;  %v1692_v33 = vor.u32 %v1857_v30, %v1691_v29  ;;  %v2092_v25 = vmov 16   ;;  %s1813_s7 = sshll.u32 %s2669_s18, 8  ;;  %vm1425_vm2 = vcmask 261120  }
  0x20   : > { %v1829_v1 = vld [vmem:[%s2193_s29 + $0x78] sm:$0xff]  ;;  %675 = vmatpush.bf16.msra.mxu0 %v1821_v0  ;;  %v1828_v3 = vld [vmem:[%s2193_s29 + $0x70] sm:$0xff]  ;;  %1862 = vmatpush.bf16.msra.mxu3 %v1821_v0  ;;  %v1827_v5 = vld [vmem:[%s2193_s29 + $0x68] sm:$0xff]  ;;  %s2508_s12 = scalar_lea.vmem %s2658_s4, %s1813_s7 }
  0x21   : > { %764 = vmatpush.bf16.msra.mxu1 %v1829_v1  ;;  %v1818_v6 = vld [vmem:[%s2193_s29 + $0x20] sm:$0xff]  ;;  %v1817_v8 = vld [vmem:[%s2193_s29 + $0x18] sm:$0xff]  ;;  %v1816_v10 = vld [vmem:[%s2193_s29 + $0x10] sm:$0xff]  ;;  %1939 = vset.pattern.permute.xlu0 %v2092_v25 }
  0x22   : > { %v1826_v7 = vld [vmem:[%s2193_s29 + $0x60] sm:$0xff]  ;;  %v1825_v9 = vld [vmem:[%s2193_s29 + $0x58] sm:$0xff]  ;;  %v1824_v11 = vld [vmem:[%s2193_s29 + $0x50] sm:$0xff]  ;;  %1940 = vset.pattern.permute.xlu1 %v2092_v25  ;;  %1941 = vset.pattern.permute.xlu2 %v2092_v25 }
  0x23   : > { %v1815_v12 = vld [vmem:[%s2193_s29 + $0x8] sm:$0xff]  ;;  %v1814_v14 = vld [vmem:[%s2193_s29] sm:$0xff]  ;;  %v1611_v43 = vld [vmem:[%s2179_s23 + $0x30] sm:$0xf] }
  0x24   : > { %676 = vmatpush.bf16.msra.mxu0 %v1820_v2  ;;  %1863 = vmatpush.bf16.msra.mxu3 %v1820_v2  ;;  %v1823_v13 = vld [vmem:[%s2193_s29 + $0x48] sm:$0xff]  ;;  %v1822_v15 = vld [vmem:[%s2193_s29 + $0x40] sm:$0xff]  ;;  %v1837_v44 = vld [vmem:[%s2179_s23 + $0x34] sm:$0xf0] }
  0x25   : > { %765 = vmatpush.bf16.msra.mxu1 %v1828_v3  ;;  %v1603_v34 = vld [vmem:[%s2179_s23 + $0x20] sm:$0xf]  ;;  %v1835_v35 = vld [vmem:[%s2179_s23 + $0x24] sm:$0xf0]  ;;  %v1834_v36 = vld [vmem:[%s2179_s23 + $0x24] sm:$0xf]  ;;  %v1612_v49 = vor.u32 %v1837_v44, %v1611_v43 }
  0x26   : > { %v1605_v37 = vld [vmem:[%s2179_s23 + $0x28] sm:$0xf0]  ;;  %v1699_v38 = vld [vmem:[%s2179_s23 + $0xe0] sm:$0xf]  ;;  %v1859_v39 = vld [vmem:[%s2179_s23 + $0xe4] sm:$0xf0]  ;;  %v1604_v40 = vor.u32 %v1835_v35, %v1603_v34 }
  0x27   : > { %v1608_v41 = vor.u32 %v1834_v36, %v1605_v37  ;;  %v1700_v42 = vor.u32 %v1859_v39, %v1699_v38  ;;  %v1836_v45 = vld [vmem:[%s2179_s23 + $0x34] sm:$0xf]  ;;  %v1613_v46 = vld [vmem:[%s2179_s23 + $0x38] sm:$0xf0]  ;;  %v1707_v47 = vld [vmem:[%s2179_s23 + $0xf0] sm:$0xf] }
  0x28   : > { %677 = vmatpush.bf16.msra.mxu0 %v1819_v4  ;;  %1864 = vmatpush.bf16.msra.mxu3 %v1819_v4  ;;  %v1861_v48 = vld [vmem:[%s2179_s23 + $0xf4] sm:$0xf0]  ;;  %v1616_v50 = vor.u32 %v1836_v45, %v1613_v46  ;;  %v1619_v52 = vld [vmem:[%s2179_s23 + $0x40] sm:$0xf]  ;;  %v1839_v53 = vld [vmem:[%s2179_s23 + $0x44] sm:$0xf0] }
  0x29   : > { %766 = vmatpush.bf16.msra.mxu1 %v1827_v5  ;;  %v1708_v51 = vor.u32 %v1861_v48, %v1707_v47  ;;  %v1838_v54 = vld [vmem:[%s2179_s23 + $0x44] sm:$0xf]  ;;  %v1621_v55 = vld [vmem:[%s2179_s23 + $0x48] sm:$0xf0]  ;;  %v1620_v58 = vor.u32 %v1839_v53, %v1619_v52  ;;  %v1627_v61 = vld [vmem:[%s2179_s23 + $0x50] sm:$0xf] }
  0x2a   : > { %v1854_v56 = vld [vmem:[%s2179_s23 + $0xc4] sm:$0xf]  ;;  %v1685_v57 = vld [vmem:[%s2179_s23 + $0xc8] sm:$0xf0]  ;;  %v1624_v59 = vor.u32 %v1838_v54, %v1621_v55  ;;  %v1841_v62 = vld [vmem:[%s2179_s23 + $0x54] sm:$0xf0] }
  0x2b   : > { %v1688_v60 = vor.u32 %v1854_v56, %v1685_v57  ;;  %v1840_v63 = vld [vmem:[%s2179_s23 + $0x54] sm:$0xf]  ;;  %v1629_v0 = vld [vmem:[%s2179_s23 + $0x58] sm:$0xf0]  ;;  %v1643_v16 = vld [vmem:[%s2179_s23 + $0x70] sm:$0xf] }
  0x2c   : > { %678 = vmatpush.bf16.msra.mxu0 %v1818_v6  ;;  %1865 = vmatpush.bf16.msra.mxu3 %v1818_v6  ;;  %v1693_v2 = vld [vmem:[%s2179_s23 + $0xd8] sm:$0xf0]  ;;  %v1632_v4 = vor.u32 %v1840_v63, %v1629_v0  ;;  %v1635_v6 = vld [vmem:[%s2179_s23 + $0x60] sm:$0xf]  ;;  %v1845_v17 = vld [vmem:[%s2179_s23 + $0x74] sm:$0xf0] }
  0x2d   : > { %767 = vmatpush.bf16.msra.mxu1 %v1826_v7  ;;  %v1844_v18 = vld [vmem:[%s2179_s23 + $0x74] sm:$0xf]  ;;  %v1645_v19 = vld [vmem:[%s2179_s23 + $0x78] sm:$0xf0]  ;;  %v1651_v26 = vld [vmem:[%s2179_s23 + $0x80] sm:$0xf] }
  0x2e   : > { %v1860_v20 = vld [vmem:[%s2179_s23 + $0xf4] sm:$0xf]  ;;  %v1709_v21 = vld [vmem:[%s2179_s23 + $0xf8] sm:$0xf0]  ;;  %v1847_v27 = vld [vmem:[%s2179_s23 + $0x84] sm:$0xf0] }
  0x2f   : > { %v1846_v28 = vld [vmem:[%s2179_s23 + $0x84] sm:$0xf]  ;;  %v1653_v29 = vld [vmem:[%s2179_s23 + $0x88] sm:$0xf0]  ;;  %v1652_v30 = vor.u32 %v1847_v27, %v1651_v26  ;;  %v1659_v43 = vld [vmem:[%s2179_s23 + $0x90] sm:$0xf] }
  0x30   : > { %679 = vmatpush.bf16.msra.mxu0 %v1817_v8  ;;  %1866 = vmatpush.bf16.msra.mxu3 %v1817_v8  ;;  %v2091_v8 = vmov 0.0   ;;  %v1849_v44 = vld [vmem:[%s2179_s23 + $0x94] sm:$0xf0]  ;;  %v1848_v45 = vld [vmem:[%s2179_s23 + $0x94] sm:$0xf] }
  0x31   : > { %768 = vmatpush.bf16.msra.mxu1 %v1825_v9  ;;  %286 = vst.msk [vmem:[#allocation2] sm:$0xff] %vm285_vm0, %v2091_v8  ;;  %v1661_v46 = vld [vmem:[%s2179_s23 + $0x98] sm:$0xf0]  ;;  %v1675_v26 = vld [vmem:[%s2179_s23 + $0xb0] sm:$0xf] }
  0x32   : > { %287 = vst.msk [vmem:[#allocation2 + $0x8] sm:$0xff] %vm285_vm0, %v2091_v8  ;;  %v1853_v27 = vld [vmem:[%s2179_s23 + $0xb4] sm:$0xf0] }
  0x33   : > { %288 = vst.msk [vmem:[#allocation2 + $0x10] sm:$0xff] %vm285_vm0, %v2091_v8 }
  0x34   : > { %680 = vmatpush.bf16.msra.mxu0 %v1816_v10  ;;  %1867 = vmatpush.bf16.msra.mxu3 %v1816_v10  ;;  %v1637_v10 = vld [vmem:[%s2179_s23 + $0x68] sm:$0xf0]  ;;  %289 = vst.msk [vmem:[#allocation2 + $0x18] sm:$0xff] %vm285_vm0, %v2091_v8 }
  0x35   : > { %769 = vmatpush.bf16.msra.mxu1 %v1824_v11  ;;  %290 = vst.msk [vmem:[#allocation2 + $0x20] sm:$0xff] %vm285_vm0, %v2091_v8 }
  0x36   : > { %291 = vst.msk [vmem:[#allocation2 + $0x28] sm:$0xff] %vm285_vm0, %v2091_v8 }
  0x37   : > { %292 = vst.msk [vmem:[#allocation2 + $0x30] sm:$0xff] %vm285_vm0, %v2091_v8 }
  0x38   : > { %681 = vmatpush.bf16.msra.mxu0 %v1815_v12  ;;  %1868 = vmatpush.bf16.msra.mxu3 %v1815_v12  ;;  %v1701_v12 = vld [vmem:[%s2179_s23 + $0xe8] sm:$0xf0]  ;;  %293 = vst.msk [vmem:[#allocation2 + $0x38] sm:$0xff] %vm285_vm0, %v2091_v8 }
  0x39   : > { %770 = vmatpush.bf16.msra.mxu1 %v1823_v13  ;;  %294 = vst.msk [vmem:[#allocation2 + $0x40] sm:$0xff] %vm285_vm0, %v2091_v8  ;;  %v356_v39 = vld [vmem:[#allocation2 + $0x8] sm:$0xff] }
  0x3a   : > { %295 = vst.msk [vmem:[#allocation2 + $0x48] sm:$0xff] %vm285_vm0, %v2091_v8  ;;  %v357_v53 = vld [vmem:[#allocation2 + $0x10] sm:$0xff] }
  0x3b   : > { %296 = vst.msk [vmem:[#allocation2 + $0x50] sm:$0xff] %vm285_vm0, %v2091_v8 }
  0x3c   : > { %682 = vmatpush.bf16.msra.mxu0 %v1814_v14  ;;  %1869 = vmatpush.bf16.msra.mxu3 %v1814_v14  ;;  %297 = vst.msk [vmem:[#allocation2 + $0x58] sm:$0xff] %vm285_vm0, %v2091_v8 }
  0x3d   : > { %771 = vmatpush.bf16.msra.mxu1 %v1822_v15  ;;  %298 = vst.msk [vmem:[#allocation2 + $0x60] sm:$0xff] %vm285_vm0, %v2091_v8 }
  0x3e   : > { %299 = vst.msk [vmem:[#allocation2 + $0x68] sm:$0xff] %vm285_vm0, %v2091_v8 }
  0x3f   : > { %683 = vmatmul.bf16.vlgmr.msra.gmra.mxu0 %v1588_v22  ;;  %743 = vmatmul.bf16.vlgmr.msra.gmra.mxu3 %v1684_v24  ;;  %300 = vst.msk [vmem:[#allocation2 + $0x70] sm:$0xff] %vm285_vm0, %v2091_v8  ;;  %v1644_v22 = vor.u32 %v1845_v17, %v1643_v16  ;;  %v1712_v24 = vor.u32 %v1860_v20, %v1709_v21 }
  0x40   : > { %1870 = vmatpush.bf16.msrb.mxu3 %v1829_v1  ;;  %772 = vmatmul.bf16.vlgmr.msra.gmra.mxu1 %v1592_v23  ;;  %v1856_v1 = vld [vmem:[%s2179_s23 + $0xd4] sm:$0xf]  ;;  %301 = vst.msk [vmem:[#allocation2 + $0x78] sm:$0xff] %vm285_vm0, %v2091_v8  ;;  %v1648_v23 = vor.u32 %v1844_v18, %v1645_v19 }
  0x41   : > { %302 = vst.msk [vmem:[#allocation2 + $0x80] sm:$0xff] %vm285_vm0, %v2091_v8 }
  0x42   : > { %303 = vst.msk [vmem:[#allocation2 + $0x88] sm:$0xff] %vm285_vm0, %v2091_v8 }
  0x43   : > { %304 = vst.msk [vmem:[#allocation2 + $0x90] sm:$0xff] %vm285_vm0, %v2091_v8 }
  0x44   : > { %1871 = vmatpush.bf16.msrb.mxu3 %v1828_v3  ;;  %v1628_v3 = vor.u32 %v1841_v62, %v1627_v61  ;;  %305 = vst.msk [vmem:[#allocation2 + $0x98] sm:$0xff] %vm285_vm0, %v2091_v8  ;;  %v358_v62 = vld [vmem:[#allocation2 + $0x18] sm:$0xff] }
  0x45   : > { %306 = vst.msk [vmem:[#allocation2 + $0xa0] sm:$0xff] %vm285_vm0, %v2091_v8 }
  0x46   : > { %307 = vst.msk [vmem:[#allocation2 + $0xa8] sm:$0xff] %vm285_vm0, %v2091_v8 }
  0x47   : > { %308 = vst.msk [vmem:[#allocation2 + $0xb0] sm:$0xff] %vm285_vm0, %v2091_v8 }
  0x48   : > { %1872 = vmatpush.bf16.msrb.mxu3 %v1827_v5  ;;  %v1696_v5 = vor.u32 %v1856_v1, %v1693_v2  ;;  %309 = vst.msk [vmem:[#allocation2 + $0xb8] sm:$0xff] %vm285_vm0, %v2091_v8  ;;  %v1667_v2 = vld [vmem:[%s2179_s23 + $0xa0] sm:$0xf] }
  0x49   : > { %310 = vst.msk [vmem:[#allocation2 + $0xc0] sm:$0xff] %vm285_vm0, %v2091_v8 }
  0x4a   : > { %311 = vst.msk [vmem:[#allocation2 + $0xc8] sm:$0xff] %vm285_vm0, %v2091_v8 }
  0x4b   : > { %312 = vst.msk [vmem:[#allocation2 + $0xd0] sm:$0xff] %vm285_vm0, %v2091_v8 }
  0x4c   : > { %1873 = vmatpush.bf16.msrb.mxu3 %v1826_v7  ;;  %v1843_v7 = vld [vmem:[%s2179_s23 + $0x64] sm:$0xf0]  ;;  %313 = vst.msk [vmem:[#allocation2 + $0xd8] sm:$0xff] %vm285_vm0, %v2091_v8 }
  0x4d   : > { %314 = vst.msk [vmem:[#allocation2 + $0xe0] sm:$0xff] %vm285_vm0, %v2091_v8 }
  0x4e   : > { %315 = vst.msk [vmem:[#allocation2 + $0xe8] sm:$0xff] %vm285_vm0, %v2091_v8 }
  0x4f   : > { %688 = vmatmul.bf16.gmra.mxu0 %v1596_v31  ;;  %748 = vmatmul.bf16.gmra.mxu3 %v1692_v33  ;;  %316 = vst.msk [vmem:[#allocation2 + $0xf0] sm:$0xff] %vm285_vm0, %v2091_v8  ;;  %v1656_v31 = vor.u32 %v1846_v28, %v1653_v29  ;;  %v355_v33 = vld [vmem:[#allocation2] sm:$0xff]  ;;  %v1852_v28 = vld [vmem:[%s2179_s23 + $0xb4] sm:$0xf]  ;;  %v1677_v29 = vld [vmem:[%s2179_s23 + $0xb8] sm:$0xf0] }
  0x50   : > { %1874 = vmatpush.bf16.msrb.mxu3 %v1825_v9  ;;  %777 = vmatmul.bf16.gmra.mxu1 %v1600_v32  ;;  %v1842_v9 = vld [vmem:[%s2179_s23 + $0x64] sm:$0xf]  ;;  %317 = vst.msk [vmem:[#allocation2 + $0xf8] sm:$0xff] %vm285_vm0, %v2091_v8 }
  0x51   : > { %v1640_v14 = vor.u32 %v1842_v9, %v1637_v10 }
  0x54   : > { %1875 = vmatpush.bf16.msrb.mxu3 %v1824_v11  ;;  %v1858_v11 = vld [vmem:[%s2179_s23 + $0xe4] sm:$0xf] }
  0x58   : > { %1876 = vmatpush.bf16.msrb.mxu3 %v1823_v13  ;;  %v1636_v13 = vor.u32 %v1843_v7, %v1635_v6 }
  0x5c   : > { %1877 = vmatpush.bf16.msrb.mxu3 %v1822_v15  ;;  %v1704_v15 = vor.u32 %v1858_v11, %v1701_v12 }
  0x5f   : > { %693 = vmatmul.bf16.gmra.mxu0 %v1604_v40  ;;  %753 = vmatmul.bf16.gmra.mxu3 %v1700_v42 }
  0x60   : > { %782 = vmatmul.bf16.gmra.mxu1 %v1608_v41 }
  0x6f   : > { %698 = vmatmul.bf16.gmra.mxu0 %v1612_v49  ;;  %758 = vmatmul.bf16.gmra.mxu3 %v1708_v51  ;;  %v1660_v49 = vor.u32 %v1849_v44, %v1659_v43 }
  0x70   : > { %787 = vmatmul.bf16.gmra.mxu1 %v1616_v50  ;;  %v1664_v50 = vor.u32 %v1848_v45, %v1661_v46 }
  0x7f   : > { %703 = vmatmul.bf16.gmra.mxu0 %v1620_v58  ;;  %832 = vmatmul.bf16.vlgmr.msrb.gmra.mxu3 %v1688_v60 }
  0x80   : > { %792 = vmatmul.bf16.gmra.mxu1 %v1624_v59 }
  0x8f   : > { %708 = vmatmul.bf16.gmra.mxu0 %v1628_v3  ;;  %837 = vmatmul.bf16.gmra.mxu3 %v1696_v5  ;;  %v1851_v3 = vld [vmem:[%s2179_s23 + $0xa4] sm:$0xf0]  ;;  %v1669_v5 = vld [vmem:[%s2179_s23 + $0xa8] sm:$0xf0] }
  0x90   : > { %797 = vmatmul.bf16.gmra.mxu1 %v1632_v4  ;;  %v1850_v4 = vld [vmem:[%s2179_s23 + $0xa4] sm:$0xf]  ;;  %v1668_v9 = vor.u32 %v1851_v3, %v1667_v2 }
  0x91   : > { %v1672_v10 = vor.u32 %v1850_v4, %v1669_v5  ;;  %v379_v3 = vld [vmem:[#allocation2 + $0xc0] sm:$0xff] }
  0x9f   : > { %713 = vmatmul.bf16.gmra.mxu0 %v1636_v13  ;;  %842 = vmatmul.bf16.gmra.mxu3 %v1704_v15  ;;  %v359_v13 = vld [vmem:[#allocation2 + $0x20] sm:$0xff] }
  0xa0   : > { %802 = vmatmul.bf16.gmra.mxu1 %v1640_v14 }
  0xaf   : > { %718 = vmatmul.bf16.gmra.mxu0 %v1644_v22  ;;  %847 = vmatmul.bf16.gmra.mxu3 %v1712_v24  ;;  %v360_v22 = vld [vmem:[#allocation2 + $0x28] sm:$0xff] }
  0xb0   : > { %807 = vmatmul.bf16.gmra.mxu1 %v1648_v23 }
  0xbc   : > { %v684_v32 = vpop.f32.mrf.mxu0 }
  0xbd   : > { %v773_v34 = vpop.f32.mrf.mxu1 }
  0xbe   : > { %v774_v35 = vadd.f32 %v773_v34, %v684_v32  ;;  %v1680_v34 = vor.u32 %v1852_v28, %v1677_v29 }
  0xbf   : > { %723 = vmatmul.bf16.gmra.mxu0 %v1652_v30 }
  0xc0   : > { %v853_v36 = vadd.f32 %v774_v35, %v355_v33  ;;  %812 = vmatmul.bf16.gmra.mxu1 %v1656_v31  ;;  %v1676_v33 = vor.u32 %v1853_v27, %v1675_v26 }
  0xc2   : > { %886 = vst.msk [vmem:[#allocation2] sm:$0xff] %vm285_vm0, %v853_v36  ;;  %v2296_v37 = vpop.f32.mrf.mxu3 }
  0xc4   : > { %v686_v38 = vpop.f32.mrf.mxu0 }
  0xc5   : > { %v775_v40 = vpop.f32.mrf.mxu1 }
  0xc6   : > { %v776_v41 = vadd.f32 %v775_v40, %v686_v38  ;;  %v361_v38 = vld [vmem:[#allocation2 + $0x30] sm:$0xff] }
  0xc8   : > { %v854_v42 = vadd.f32 %v776_v41, %v356_v39 }
  0xc9   : > { %v2302_v47 = vld [vmem:[#allocation2] sm:$0xff] }
  0xca   : > { %887 = vst.msk [vmem:[#allocation2 + $0x8] sm:$0xff] %vm285_vm0, %v854_v42  ;;  %v953_v48 = vmax.f32 %v2302_v47, 1.0  ;;  %v2306_v51 = vpop.f32.mrf.mxu3 }
  0xcc   : > { %1943 = vrcp.f32 %v953_v48  ;;  %v689_v52 = vpop.f32.mrf.mxu0  ;;  %v362_v48 = vld [vmem:[#allocation2 + $0x38] sm:$0xff] }
  0xcd   : > { %v778_v54 = vpop.f32.mrf.mxu1 }
  0xce   : > { %v779_v55 = vadd.f32 %v778_v54, %v689_v52 }
  0xcf   : > { %728 = vmatmul.bf16.gmra.mxu0 %v1660_v49 }
  0xd0   : > { %v855_v56 = vadd.f32 %v779_v55, %v357_v53  ;;  %817 = vmatmul.bf16.gmra.mxu1 %v1664_v50 }
  0xd1   : > { %v2308_v57 = vld [vmem:[#allocation2 + $0x8] sm:$0xff] }
  0xd2   : > { %v1944_v58 = vpop.eup %1943  ;;  %888 = vst.msk [vmem:[#allocation2 + $0x10] sm:$0xff] %vm285_vm0, %v855_v56  ;;  %v954_v59 = vmax.f32 %v2308_v57, 1.0  ;;  %v2312_v60 = vpop.f32.mrf.mxu3 }
  0xd3   : > { %1019 = vperm.xlu0 %1939, %v1944_v58  }
  0xd4   : > { %1945 = vrcp.f32 %v954_v59  ;;  %v691_v61 = vpop.f32.mrf.mxu0  ;;  %v363_v59 = vld [vmem:[#allocation2 + $0x40] sm:$0xff] }
  0xd5   : > { %v780_v63 = vpop.f32.mrf.mxu1 }
  0xd6   : > { %v781_v0 = vadd.f32 %v780_v63, %v691_v61 }
  0xd8   : > { %v856_v1 = vadd.f32 %v781_v0, %v358_v62 }
  0xd9   : > { %v2318_v6 = vld [vmem:[#allocation2 + $0x10] sm:$0xff] }
  0xda   : > { %v1946_v7 = vpop.eup %1945  ;;  %889 = vst.msk [vmem:[#allocation2 + $0x18] sm:$0xff] %vm285_vm0, %v856_v1  ;;  %v955_v8 = vmax.f32 %v2318_v6, 1.0  ;;  %v2322_v11 = vpop.f32.mrf.mxu3 }
  0xdb   : > { %1024 = vperm.xlu0 %1939, %v1946_v7   ;;  %v364_v7 = vld [vmem:[#allocation2 + $0x48] sm:$0xff] }
  0xdc   : > { %1947 = vrcp.f32 %v955_v8  ;;  %v694_v12 = vpop.f32.mrf.mxu0 }
  0xdd   : > { %v783_v14 = vpop.f32.mrf.mxu1 }
  0xde   : > { %v784_v15 = vadd.f32 %v783_v14, %v694_v12 }
  0xdf   : > { %733 = vmatmul.bf16.gmra.mxu0 %v1668_v9 }
  0xe0   : > { %v857_v16 = vadd.f32 %v784_v15, %v359_v13  ;;  %822 = vmatmul.bf16.gmra.mxu1 %v1672_v10 }
  0xe1   : > { %v2324_v17 = vld [vmem:[#allocation2 + $0x18] sm:$0xff] }
  0xe2   : > { %v1948_v18 = vpop.eup %1947  ;;  %890 = vst.msk [vmem:[#allocation2 + $0x20] sm:$0xff] %vm285_vm0, %v857_v16  ;;  %v956_v19 = vmax.f32 %v2324_v17, 1.0  ;;  %v2328_v20 = vpop.f32.mrf.mxu3 }
  0xe3   : > { %1029 = vperm.xlu1 %1940, %v1948_v18   ;;  %v380_v18 = vld [vmem:[#allocation2 + $0xc8] sm:$0xff] }
  0xe4   : > { %1949 = vrcp.f32 %v956_v19  ;;  %v696_v21 = vpop.f32.mrf.mxu0 }
  0xe5   : > { %v785_v23 = vpop.f32.mrf.mxu1 }
  0xe6   : > { %v786_v24 = vadd.f32 %v785_v23, %v696_v21 }
  0xe8   : > { %v858_v25 = vadd.f32 %v786_v24, %v360_v22  ;;  %v365_v22 = vld [vmem:[#allocation2 + $0x50] sm:$0xff] }
  0xe9   : > { %v2334_v30 = vld [vmem:[#allocation2 + $0x20] sm:$0xff] }
  0xea   : > { %v1950_v31 = vpop.eup %1949  ;;  %891 = vst.msk [vmem:[#allocation2 + $0x28] sm:$0xff] %vm285_vm0, %v858_v25  ;;  %v957_v32 = vmax.f32 %v2334_v30, 1.0  ;;  %v2338_v35 = vpop.f32.mrf.mxu3 }
  0xeb   : > { %1034 = vperm.xlu1 %1940, %v1950_v31   ;;  %v381_v31 = vld [vmem:[#allocation2 + $0xd0] sm:$0xff] }
  0xec   : > { %1951 = vrcp.f32 %v957_v32  ;;  %v699_v36 = vpop.f32.mrf.mxu0 }
  0xed   : > { %v788_v39 = vpop.f32.mrf.mxu1 }
  0xee   : > { %v789_v40 = vadd.f32 %v788_v39, %v699_v36 }
  0xef   : > { %738 = vmatmul.bf16.gmra.mxu0 %v1676_v33 }
  0xf0   : > { %v859_v41 = vadd.f32 %v789_v40, %v361_v38  ;;  %827 = vmatmul.bf16.gmra.mxu1 %v1680_v34  ;;  %v366_v34 = vld [vmem:[#allocation2 + $0x58] sm:$0xff] }
  0xf1   : > { %v2340_v42 = vld [vmem:[#allocation2 + $0x28] sm:$0xff] }
  0xf2   : > { %v1952_v43 = vpop.eup %1951  ;;  %892 = vst.msk [vmem:[#allocation2 + $0x30] sm:$0xff] %vm285_vm0, %v859_v41  ;;  %v958_v44 = vmax.f32 %v2340_v42, 1.0  ;;  %v2344_v45 = vpop.f32.mrf.mxu3 }
  0xf3   : > { %1039 = vperm.xlu2 %1941, %v1952_v43  }
  0xf4   : > { %1953 = vrcp.f32 %v958_v44  ;;  %v701_v46 = vpop.f32.mrf.mxu0 }
  0xf5   : > { %v790_v49 = vpop.f32.mrf.mxu1 }
  0xf6   : > { %v791_v50 = vadd.f32 %v790_v49, %v701_v46  ;;  %v382_v46 = vld [vmem:[#allocation2 + $0xd8] sm:$0xff] }
  0xf8   : > { %v860_v52 = vadd.f32 %v791_v50, %v362_v48  ;;  %v367_v50 = vld [vmem:[#allocation2 + $0x60] sm:$0xff] }
  0xf9   : > { %v2346_v53 = vld [vmem:[#allocation2 + $0x30] sm:$0xff] }
  0xfa   : > { %v1954_v54 = vpop.eup %1953  ;;  %893 = vst.msk [vmem:[#allocation2 + $0x38] sm:$0xff] %vm285_vm0, %v860_v52  ;;  %v959_v55 = vmax.f32 %v2346_v53, 1.0  ;;  %v2350_v56 = vpop.f32.mrf.mxu3 }
  0xfb   : > { %1044 = vperm.xlu2 %1941, %v1954_v54  }
  0xfc   : > { %1955 = vrcp.f32 %v959_v55  ;;  %v704_v58 = vpop.f32.mrf.mxu0 }
  0xfd   : > { %v793_v61 = vpop.f32.mrf.mxu1 }
  0xfe   : > { %v794_v62 = vadd.f32 %v793_v61, %v704_v58 }
 0x100   : > { %v861_v63 = vadd.f32 %v794_v62, %v363_v59 }
 0x101   : > { %v2352_v0 = vld [vmem:[#allocation2 + $0x38] sm:$0xff] }
 0x102   : > { %v1956_v1 = vpop.eup %1955  ;;  %894 = vst.msk [vmem:[#allocation2 + $0x40] sm:$0xff] %vm285_vm0, %v861_v63  ;;  %v960_v2 = vmax.f32 %v2352_v0, 1.0  ;;  %v833_v4 = vpop.f32.mrf.mxu3  ;;  %v383_v63 = vld [vmem:[#allocation2 + $0xe0] sm:$0xff] }
 0x103   : > { %1049 = vperm.xlu0 %1939, %v1956_v1   ;;  %v834_v9 = vadd.f32 %v833_v4, %v2296_v37 }
 0x104   : > { %1957 = vrcp.f32 %v960_v2  ;;  %v706_v5 = vpop.f32.mrf.mxu0 }
 0x105   : > { %v795_v8 = vpop.f32.mrf.mxu1  ;;  %v877_v12 = vadd.f32 %v834_v9, %v379_v3  ;;  %v368_v3 = vld [vmem:[#allocation2 + $0x68] sm:$0xff]  ;;  %v1209_v9 = vld [vmem:[%s2656_s2] sm:$0xff] }
 0x106   : > { %v796_v10 = vadd.f32 %v795_v8, %v706_v5 }
 0x107   : > { %910 = vst.msk [vmem:[#allocation2 + $0xc0] sm:$0xff] %vm285_vm0, %v877_v12 }
 0x108   : > { %v862_v13 = vadd.f32 %v796_v10, %v364_v7 }
 0x109   : > { %v2358_v14 = vld [vmem:[#allocation2 + $0x40] sm:$0xff] }
 0x10a   : > { %v1958_v15 = vpop.eup %1957  ;;  %895 = vst.msk [vmem:[#allocation2 + $0x48] sm:$0xff] %vm285_vm0, %v862_v13  ;;  %v961_v16 = vmax.f32 %v2358_v14, 1.0  ;;  %v835_v19 = vpop.f32.mrf.mxu3 }
 0x10b   : > { %1054 = vperm.xlu1 %1940, %v1958_v15   ;;  %v836_v37 = vadd.f32 %v835_v19, %v2306_v51  ;;  %v384_v15 = vld [vmem:[#allocation2 + $0xe8] sm:$0xff]  ;;  %v369_v19 = vld [vmem:[#allocation2 + $0x70] sm:$0xff] }
 0x10c   : > { %1959 = vrcp.f32 %v961_v16  ;;  %v709_v21 = vpop.f32.mrf.mxu0 }
 0x10d   : > { %v798_v23 = vpop.f32.mrf.mxu1  ;;  %v878_v25 = vadd.f32 %v836_v37, %v380_v18 }
 0x10e   : > { %v799_v24 = vadd.f32 %v798_v23, %v709_v21 }
 0x10f   : > { %911 = vst.msk [vmem:[#allocation2 + $0xc8] sm:$0xff] %vm285_vm0, %v878_v25 }
 0x110   : > { %v863_v26 = vadd.f32 %v799_v24, %v365_v22 }
 0x111   : > { %v2364_v27 = vld [vmem:[#allocation2 + $0x48] sm:$0xff] }
 0x112   : > { %v1960_v28 = vpop.eup %1959  ;;  %896 = vst.msk [vmem:[#allocation2 + $0x50] sm:$0xff] %vm285_vm0, %v863_v26  ;;  %v962_v29 = vmax.f32 %v2364_v27, 1.0  ;;  %v838_v32 = vpop.f32.mrf.mxu3 }
 0x113   : > { %1059 = vperm.xlu2 %1941, %v1960_v28   ;;  %v839_v51 = vadd.f32 %v838_v32, %v2312_v60 }
 0x114   : > { %1961 = vrcp.f32 %v962_v29  ;;  %v711_v33 = vpop.f32.mrf.mxu0  ;;  %v385_v29 = vld [vmem:[#allocation2 + $0xf0] sm:$0xff] }
 0x115   : > { %v800_v36 = vpop.f32.mrf.mxu1  ;;  %v879_v39 = vadd.f32 %v839_v51, %v381_v31 }
 0x116   : > { %v801_v38 = vadd.f32 %v800_v36, %v711_v33  ;;  %v370_v33 = vld [vmem:[#allocation2 + $0x78] sm:$0xff] }
 0x117   : > { %912 = vst.msk [vmem:[#allocation2 + $0xd0] sm:$0xff] %vm285_vm0, %v879_v39 }
 0x118   : > { %v864_v40 = vadd.f32 %v801_v38, %v366_v34 }
 0x119   : > { %v2370_v41 = vld [vmem:[#allocation2 + $0x50] sm:$0xff] }
 0x11a   : > { %v1962_v43 = vpop.eup %1961  ;;  %897 = vst.msk [vmem:[#allocation2 + $0x58] sm:$0xff] %vm285_vm0, %v864_v40  ;;  %v963_v44 = vmax.f32 %v2370_v41, 1.0  ;;  %v840_v48 = vpop.f32.mrf.mxu3 }
 0x11b   : > { %1064 = vperm.xlu0 %1939, %v1962_v43   ;;  %v841_v60 = vadd.f32 %v840_v48, %v2322_v11  ;;  %v1210_v11 = vld [vmem:[%s2656_s2 + $0x8] sm:$0xff] }
 0x11c   : > { %1963 = vrcp.f32 %v963_v44  ;;  %v714_v49 = vpop.f32.mrf.mxu0  ;;  %1326 = vmatpush.msra.mxu2 %v1210_v11  ;;  %1878 = vmatpush.msra.mxu3 %v1210_v11  ;;  %v386_v44 = vld [vmem:[#allocation2 + $0xf8] sm:$0xff] }
 0x11d   : > { %v803_v52 = vpop.f32.mrf.mxu1  ;;  %v880_v55 = vadd.f32 %v841_v60, %v382_v46 }
 0x11e   : > { %v804_v54 = vadd.f32 %v803_v52, %v714_v49  ;;  %1327 = vmatpush.msra.mxu2 %v1209_v9  ;;  %1879 = vmatpush.msra.mxu3 %v1209_v9  ;;  %v371_v49 = vld [vmem:[#allocation2 + $0x80] sm:$0xff]  ;;  %v373_v9 = vld [vmem:[#allocation2 + $0x90] sm:$0xff] }
 0x11f   : > { %913 = vst.msk [vmem:[#allocation2 + $0xd8] sm:$0xff] %vm285_vm0, %v880_v55 }
 0x120   : > { %v865_v58 = vadd.f32 %v804_v54, %v367_v50 }
 0x121   : > { %v2376_v59 = vld [vmem:[#allocation2 + $0x58] sm:$0xff] }
 0x122   : > { %v1964_v61 = vpop.eup %1963  ;;  %898 = vst.msk [vmem:[#allocation2 + $0x60] sm:$0xff] %vm285_vm0, %v865_v58  ;;  %v964_v62 = vmax.f32 %v2376_v59, 1.0  ;;  %v843_v1 = vpop.f32.mrf.mxu3 }
 0x123   : > { %1069 = vperm.xlu1 %1940, %v1964_v61   ;;  %v844_v5 = vadd.f32 %v843_v1, %v2328_v20 }
 0x124   : > { %1965 = vrcp.f32 %v964_v62  ;;  %v716_v2 = vpop.f32.mrf.mxu0 }
 0x125   : > { %v805_v4 = vpop.f32.mrf.mxu1  ;;  %v881_v8 = vadd.f32 %v844_v5, %v383_v63  ;;  %v372_v63 = vld [vmem:[#allocation2 + $0x88] sm:$0xff] }
 0x126   : > { %v806_v7 = vadd.f32 %v805_v4, %v716_v2 }
 0x127   : > { %914 = vst.msk [vmem:[#allocation2 + $0xe0] sm:$0xff] %vm285_vm0, %v881_v8 }
 0x128   : > { %v866_v10 = vadd.f32 %v806_v7, %v368_v3 }
 0x129   : > { %v2388_v12 = vld [vmem:[#allocation2 + $0x60] sm:$0xff] }
 0x12a   : > { %v1966_v13 = vpop.eup %1965  ;;  %899 = vst.msk [vmem:[#allocation2 + $0x68] sm:$0xff] %vm285_vm0, %v866_v10  ;;  %v965_v20 = vmax.f32 %v2388_v12, 1.0  ;;  %v845_v16 = vpop.f32.mrf.mxu3 }
 0x12b   : > { %1074 = vperm.xlu2 %1941, %v1966_v13   ;;  %v846_v22 = vadd.f32 %v845_v16, %v2338_v35 }
 0x12c   : > { %1967 = vrcp.f32 %v965_v20  ;;  %v719_v18 = vpop.f32.mrf.mxu0 }
 0x12d   : > { %v808_v21 = vpop.f32.mrf.mxu1  ;;  %v882_v37 = vadd.f32 %v846_v22, %v384_v15  ;;  %v374_v22 = vld [vmem:[#allocation2 + $0x98] sm:$0xff] }
 0x12e   : > { %v809_v23 = vadd.f32 %v808_v21, %v719_v18 }
 0x12f   : > { %915 = vst.msk [vmem:[#allocation2 + $0xe8] sm:$0xff] %vm285_vm0, %v882_v37 }
 0x130   : > { %v867_v24 = vadd.f32 %v809_v23, %v369_v19 }
 0x131   : > { %v2394_v25 = vld [vmem:[#allocation2 + $0x68] sm:$0xff] }
 0x132   : > { %v1968_v26 = vpop.eup %1967  ;;  %900 = vst.msk [vmem:[#allocation2 + $0x70] sm:$0xff] %vm285_vm0, %v867_v24  ;;  %v966_v28 = vmax.f32 %v2394_v25, 1.0  ;;  %v848_v31 = vpop.f32.mrf.mxu3 }
 0x133   : > { %1079 = vperm.xlu0 %1939, %v1968_v26   ;;  %v849_v35 = vadd.f32 %v848_v31, %v2344_v45 }
 0x134   : > { %1969 = vrcp.f32 %v966_v28  ;;  %v721_v32 = vpop.f32.mrf.mxu0 }
 0x135   : > { %v810_v34 = vpop.f32.mrf.mxu1  ;;  %v883_v51 = vadd.f32 %v849_v35, %v385_v29 }
 0x136   : > { %v811_v36 = vadd.f32 %v810_v34, %v721_v32 }
 0x137   : > { %916 = vst.msk [vmem:[#allocation2 + $0xf0] sm:$0xff] %vm285_vm0, %v883_v51 }
 0x138   : > { %v868_v38 = vadd.f32 %v811_v36, %v370_v33  ;;  %v375_v33 = vld [vmem:[#allocation2 + $0xa0] sm:$0xff] }
 0x139   : > { %v2400_v39 = vld [vmem:[#allocation2 + $0x70] sm:$0xff] }
 0x13a   : > { %v1970_v40 = vpop.eup %1969  ;;  %901 = vst.msk [vmem:[#allocation2 + $0x78] sm:$0xff] %vm285_vm0, %v868_v38  ;;  %v967_v43 = vmax.f32 %v2400_v39, 1.0  ;;  %v850_v46 = vpop.f32.mrf.mxu3 }
 0x13b   : > { %1084 = vperm.xlu1 %1940, %v1970_v40   ;;  %v851_v45 = vadd.f32 %v850_v46, %v2350_v56 }
 0x13c   : > { %1971 = vrcp.f32 %v967_v43  ;;  %v724_v48 = vpop.f32.mrf.mxu0 }
 0x13d   : > { %v813_v50 = vpop.f32.mrf.mxu1  ;;  %v884_v60 = vadd.f32 %v851_v45, %v386_v44 }
 0x13e   : > { %v814_v52 = vadd.f32 %v813_v50, %v724_v48  ;;  %v376_v48 = vld [vmem:[#allocation2 + $0xa8] sm:$0xff] }
 0x13f   : > { %917 = vst.msk [vmem:[#allocation2 + $0xf8] sm:$0xff] %vm285_vm0, %v884_v60 }
 0x140   : > { %v869_v54 = vadd.f32 %v814_v52, %v371_v49 }
 0x141   : > { %v2406_v55 = vld [vmem:[#allocation2 + $0x78] sm:$0xff] }
 0x142   : > { %v1972_v58 = vpop.eup %1971  ;;  %902 = vst.msk [vmem:[#allocation2 + $0x80] sm:$0xff] %vm285_vm0, %v869_v54  ;;  %v968_v61 = vmax.f32 %v2406_v55, 1.0 }
 0x143   : > { %1089 = vperm.xlu2 %1941, %v1972_v58  }
 0x144   : > { %1973 = vrcp.f32 %v968_v61  ;;  %v726_v62 = vpop.f32.mrf.mxu0  ;;  %v2440_v61 = vld [vmem:[#allocation2 + $0xd8] sm:$0xff] }
 0x145   : > { %v815_v1 = vpop.f32.mrf.mxu1  ;;  %v1020_v2 = vpop.permute.xlu0 %1019 }
 0x146   : > { %v816_v11 = vadd.f32 %v815_v1, %v726_v62  ;;  %v1177_v56 = vmul.f32 %v1020_v2, %v2302_v47  ;;  %v980_v2 = vmax.f32 %v2440_v61, 1.0 }
 0x148   : > { %v870_v3 = vadd.f32 %v816_v11, %v372_v63  ;;  %1777 = vmatmul.msk.f32.vlgmr.msra.gmra.mxu2 %vm1215_vm1, %v1177_v56  ;;  %v377_v63 = vld [vmem:[#allocation2 + $0xb0] sm:$0xff] }
 0x149   : > { %v2412_v4 = vld [vmem:[#allocation2 + $0x80] sm:$0xff] }
 0x14a   : > { %v1974_v5 = vpop.eup %1973  ;;  %903 = vst.msk [vmem:[#allocation2 + $0x88] sm:$0xff] %vm285_vm0, %v870_v3  ;;  %v969_v7 = vmax.f32 %v2412_v4, 1.0 }
 0x14b   : > { %1094 = vperm.xlu0 %1939, %v1974_v5  }
 0x14c   : > { %1975 = vrcp.f32 %v969_v7  ;;  %v729_v8 = vpop.f32.mrf.mxu0 }
 0x14d   : > { %v818_v10 = vpop.f32.mrf.mxu1  ;;  %v1025_v20 = vpop.permute.xlu0 %1024 }
 0x14e   : > { %v819_v13 = vadd.f32 %v818_v10, %v729_v8  ;;  %v1178_v15 = vmul.f32 %v1025_v20, %v2308_v57  ;;  %v1040_v43 = vpop.permute.xlu2 %1039  ;;  %v2449_v8 = vld [vmem:[#allocation2 + $0xc0] sm:$0xff]  ;;  %v378_v10 = vld [vmem:[#allocation2 + $0xb8] sm:$0xff] }
 0x14f   : > { %v1181_v45 = vmul.f32 %v1040_v43, %v2334_v30 }
 0x150   : > { %v871_v47 = vadd.f32 %v819_v13, %v373_v9  ;;  %1778 = vmatmul.msk.f32.gmra.mxu2 %vm1215_vm1, %v1178_v15 }
 0x151   : > { %v2418_v16 = vld [vmem:[#allocation2 + $0x88] sm:$0xff] }
 0x152   : > { %v1976_v18 = vpop.eup %1975  ;;  %904 = vst.msk [vmem:[#allocation2 + $0x90] sm:$0xff] %vm285_vm0, %v871_v47  ;;  %v970_v19 = vmax.f32 %v2418_v16, 1.0  ;;  %v977_v47 = vmax.f32 %v2449_v8, 1.0 }
 0x153   : > { %1099 = vperm.xlu1 %1940, %v1976_v18  }
 0x154   : > { %1977 = vrcp.f32 %v970_v19  ;;  %v731_v21 = vpop.f32.mrf.mxu0 }
 0x155   : > { %v820_v23 = vpop.f32.mrf.mxu1  ;;  %v1030_v24 = vpop.permute.xlu1 %1029 }
 0x156   : > { %v821_v37 = vadd.f32 %v820_v23, %v731_v21  ;;  %v1179_v26 = vmul.f32 %v1030_v24, %v2318_v6  ;;  %v1045_v58 = vpop.permute.xlu2 %1044 }
 0x157   : > { %v1182_v30 = vmul.f32 %v1045_v58, %v2340_v42 }
 0x158   : > { %v872_v57 = vadd.f32 %v821_v37, %v374_v22  ;;  %1779 = vmatmul.msk.f32.gmra.mxu2 %vm1215_vm1, %v1179_v26  ;;  %v2458_v37 = vld [vmem:[#allocation2 + $0xe0] sm:$0xff] }
 0x159   : > { %v2424_v28 = vld [vmem:[#allocation2 + $0x90] sm:$0xff] }
 0x15a   : > { %v1978_v29 = vpop.eup %1977  ;;  %905 = vst.msk [vmem:[#allocation2 + $0x98] sm:$0xff] %vm285_vm0, %v872_v57  ;;  %v971_v31 = vmax.f32 %v2424_v28, 1.0  ;;  %v981_v57 = vmax.f32 %v2458_v37, 1.0 }
 0x15b   : > { %1104 = vperm.xlu2 %1941, %v1978_v29  }
 0x15c   : > { %1979 = vrcp.f32 %v971_v31  ;;  %v734_v32 = vpop.f32.mrf.mxu0 }
 0x15d   : > { %v823_v34 = vpop.f32.mrf.mxu1  ;;  %v1035_v36 = vpop.permute.xlu1 %1034 }
 0x15e   : > { %v824_v35 = vadd.f32 %v823_v34, %v734_v32  ;;  %v1180_v51 = vmul.f32 %v1035_v36, %v2324_v17  ;;  %v2469_v36 = vld [vmem:[#allocation2 + $0xc8] sm:$0xff] }
 0x160   : > { %v873_v6 = vadd.f32 %v824_v35, %v375_v33  ;;  %1780 = vmatmul.msk.f32.gmra.mxu2 %vm1215_vm1, %v1180_v51 }
 0x161   : > { %v2430_v38 = vld [vmem:[#allocation2 + $0x98] sm:$0xff] }
 0x162   : > { %v1980_v40 = vpop.eup %1979  ;;  %906 = vst.msk [vmem:[#allocation2 + $0xa0] sm:$0xff] %vm285_vm0, %v873_v6  ;;  %v972_v44 = vmax.f32 %v2430_v38, 1.0 }
 0x163   : > { %1109 = vperm.xlu0 %1939, %v1980_v40   ;;  %v978_v40 = vmax.f32 %v2469_v36, 1.0 }
 0x164   : > { %1981 = vrcp.f32 %v972_v44  ;;  %v736_v46 = vpop.f32.mrf.mxu0 }
 0x165   : > { %v825_v49 = vpop.f32.mrf.mxu1 }
 0x166   : > { %v826_v50 = vadd.f32 %v825_v49, %v736_v46  ;;  %v2477_v49 = vld [vmem:[#allocation2 + $0xf8] sm:$0xff] }
 0x168   : > { %v874_v17 = vadd.f32 %v826_v50, %v376_v48  ;;  %1781 = vmatmul.msk.f32.gmra.mxu2 %vm1215_vm1, %v1181_v45  ;;  %v984_v45 = vmax.f32 %v2477_v49, 1.0 }
 0x169   : > { %v2436_v52 = vld [vmem:[#allocation2 + $0xa0] sm:$0xff] }
 0x16a   : > { %v1982_v60 = vpop.eup %1981  ;;  %907 = vst.msk [vmem:[#allocation2 + $0xa8] sm:$0xff] %vm285_vm0, %v874_v17  ;;  %v973_v54 = vmax.f32 %v2436_v52, 1.0 }
 0x16b   : > { %1114 = vperm.xlu1 %1940, %v1982_v60  }
 0x16c   : > { %1983 = vrcp.f32 %v973_v54  ;;  %v739_v62 = vpop.f32.mrf.mxu0 }
 0x16d   : > { %v828_v1 = vpop.f32.mrf.mxu1  ;;  %1985 = vrcp.f32 %v980_v2  ;;  %v1060_v35 = vpop.permute.xlu2 %1059 }
 0x16e   : > { %v829_v11 = vadd.f32 %v828_v1, %v739_v62  ;;  %v1185_v51 = vmul.f32 %v1060_v35, %v2358_v14  ;;  %v2480_v14 = vld [vmem:[#allocation2 + $0xd0] sm:$0xff] }
 0x16f   : > { %v979_v17 = vmax.f32 %v2480_v14, 1.0 }
 0x170   : > { %v875_v56 = vadd.f32 %v829_v11, %v377_v63  ;;  %1782 = vmatmul.msk.f32.gmra.mxu2 %vm1215_vm1, %v1182_v30 }
 0x171   : > { %v2445_v3 = vld [vmem:[#allocation2 + $0xa8] sm:$0xff] }
 0x172   : > { %v1984_v5 = vpop.eup %1983  ;;  %908 = vst.msk [vmem:[#allocation2 + $0xb0] sm:$0xff] %vm285_vm0, %v875_v56  ;;  %v974_v7 = vmax.f32 %v2445_v3, 1.0 }
 0x173   : > { %1119 = vperm.xlu2 %1941, %v1984_v5   ;;  %v1986_v19 = vpop.eup %1985 }
 0x174   : > { %1987 = vrcp.f32 %v974_v7  ;;  %v741_v9 = vpop.f32.mrf.mxu0 }
 0x175   : > { %v830_v42 = vpop.f32.mrf.mxu1  ;;  %v1050_v20 = vpop.permute.xlu0 %1049  ;;  %1989 = vrcp.f32 %v977_v47 }
 0x176   : > { %v831_v13 = vadd.f32 %v830_v42, %v741_v9  ;;  %v1183_v15 = vmul.f32 %v1050_v20, %v2346_v53  ;;  %v2460_v53 = vld [vmem:[#allocation2 + $0xf0] sm:$0xff] }
 0x177   : > { %v983_v29 = vmax.f32 %v2460_v53, 1.0 }
 0x178   : > { %v876_v18 = vadd.f32 %v831_v13, %v378_v10  ;;  %1783 = vmatmul.msk.f32.gmra.mxu2 %vm1215_vm1, %v1183_v15 }
 0x179   : > { %v2454_v21 = vld [vmem:[#allocation2 + $0xb0] sm:$0xff] }
 0x17a   : > { %v1988_v22 = vpop.eup %1987  ;;  %909 = vst.msk [vmem:[#allocation2 + $0xb8] sm:$0xff] %vm285_vm0, %v876_v18  ;;  %v975_v23 = vmax.f32 %v2454_v21, 1.0 }
 0x17b   : > { %1154 = vperm.xlu2 %1941, %v1986_v19   ;;  %1124 = vperm.xlu0 %1939, %v1988_v22   ;;  %v1990_v31 = vpop.eup %1989 }
 0x17c   : > { %1991 = vrcp.f32 %v975_v23 }
 0x17d   : > { %v1055_v24 = vpop.permute.xlu1 %1054  ;;  %1993 = vrcp.f32 %v981_v57 }
 0x17e   : > { %v1184_v26 = vmul.f32 %v1055_v24, %v2352_v0  ;;  %1995 = vrcp.f32 %v983_v29  ;;  %v2471_v0 = vld [vmem:[#allocation2 + $0xe8] sm:$0xff] }
 0x17f   : > { %v982_v44 = vmax.f32 %v2471_v0, 1.0 }
 0x180   : > { %1784 = vmatmul.msk.f32.gmra.mxu2 %vm1215_vm1, %v1184_v26 }
 0x181   : > { %v2466_v32 = vld [vmem:[#allocation2 + $0xb8] sm:$0xff] }
 0x182   : > { %v1992_v33 = vpop.eup %1991  ;;  %v976_v34 = vmax.f32 %v2466_v32, 1.0 }
 0x183   : > { %1139 = vperm.xlu2 %1941, %v1990_v31   ;;  %1129 = vperm.xlu1 %1940, %v1992_v33   ;;  %v1994_v6 = vpop.eup %1993 }
 0x184   : > { %1997 = vrcp.f32 %v976_v34  ;;  %v1996_v43 = vpop.eup %1995 }
 0x185   : > { %1999 = vrcp.f32 %v978_v40  ;;  %v1075_v1 = vpop.permute.xlu2 %1074 }
 0x186   : > { %2001 = vrcp.f32 %v982_v44  ;;  %v1188_v11 = vmul.f32 %v1075_v1, %v2376_v59 }
 0x187   : > { %2003 = vrcp.f32 %v984_v45 }
 0x188   : > { %1785 = vmatmul.msk.f32.gmra.mxu2 %vm1215_vm1, %v1185_v51  ;;  %2005 = vrcp.f32 %v979_v17 }
 0x18a   : > { %v1998_v46 = vpop.eup %1997 }
 0x18b   : > { %1169 = vperm.xlu2 %1941, %v1996_v43   ;;  %1159 = vperm.xlu1 %1940, %v1994_v6   ;;  %v2000_v60 = vpop.eup %1999 }
 0x18c   : > { %1134 = vperm.xlu0 %1939, %v1998_v46   ;;  %v2002_v54 = vpop.eup %2001 }
 0x18d   : > { %v1065_v48 = vpop.permute.xlu0 %1064 }
 0x18e   : > { %v1186_v50 = vmul.f32 %v1065_v48, %v2364_v27  ;;  %v2004_v27 = vpop.eup %2003 }
 0x18f   : > { %v2006_v63 = vpop.eup %2005 }
 0x190   : > { %1786 = vmatmul.msk.f32.gmra.mxu2 %vm1215_vm1, %v1186_v50 }
 0x193   : > { %1144 = vperm.xlu1 %1940, %v2000_v60  }
 0x194   : > { %1164 = vperm.xlu0 %1939, %v2002_v54  }
 0x195   : > { %v1070_v58 = vpop.permute.xlu1 %1069 }
 0x196   : > { %v1187_v62 = vmul.f32 %v1070_v58, %v2370_v41 }
 0x198   : > { %1787 = vmatmul.msk.f32.gmra.mxu2 %vm1215_vm1, %v1187_v62 }
 0x19b   : > { %1174 = vperm.xlu1 %1940, %v2004_v27  }
 0x19c   : > { %1149 = vperm.xlu0 %1939, %v2006_v63  }
 0x19d   : > { %v1090_v5 = vpop.permute.xlu2 %1089 }
 0x19e   : > { %v1191_v7 = vmul.f32 %v1090_v5, %v2400_v39 }
 0x1a0   : > { %1788 = vmatmul.msk.f32.gmra.mxu2 %vm1215_vm1, %v1188_v11 }
 0x1a5   : > { %v1080_v30 = vpop.permute.xlu0 %1079 }
 0x1a6   : > { %v1189_v2 = vmul.f32 %v1080_v30, %v2388_v12 }
 0x1a8   : > { %1789 = vmatmul.msk.f32.gmra.mxu2 %vm1215_vm1, %v1189_v2 }
 0x1ad   : > { %v1085_v56 = vpop.permute.xlu1 %1084 }
 0x1ae   : > { %v1190_v41 = vmul.f32 %v1085_v56, %v2394_v25  ;;  %v2503_v25 = vld [vmem:[%s2657_s3] ss:$0 sm:$0xff] }
 0x1b0   : > { %1790 = vmatmul.msk.f32.gmra.mxu2 %vm1215_vm1, %v1190_v41 }
 0x1b5   : > { %v1105_v10 = vpop.permute.xlu2 %1104 }
 0x1b6   : > { %v1194_v13 = vmul.f32 %v1105_v10, %v2418_v16 }
 0x1b8   : > { %1791 = vmatmul.msk.f32.gmra.mxu2 %vm1215_vm1, %v1191_v7 }
 0x1bd   : > { %v1095_v9 = vpop.permute.xlu0 %1094 }
 0x1be   : > { %v1192_v59 = vmul.f32 %v1095_v9, %v2406_v55 }
 0x1c0   : > { %1792 = vmatmul.msk.f32.gmra.mxu2 %vm1215_vm1, %v1192_v59 }
 0x1c5   : > { %v1100_v42 = vpop.permute.xlu1 %1099 }
 0x1c6   : > { %v1193_v12 = vmul.f32 %v1100_v42, %v2412_v4 }
 0x1c8   : > { %1793 = vmatmul.msk.f32.gmra.mxu2 %vm1215_vm1, %v1193_v12 }
 0x1cb   : > { %v1329_v39 = vpop.f32.mrf.mxu2 }
 0x1cc   : > { %v1330_v55 = vadd.f32 %v2503_v25, %v1329_v39 }
 0x1cd   : > { %v1120_v4 = vpop.permute.xlu2 %1119 }
 0x1ce   : > { %1426 = vst.msk [vmem:[%s2508_s12] sm:$0xff] %vm1425_vm2, %v1330_v55  ;;  %v1197_v57 = vmul.f32 %v1120_v4, %v2436_v52 }
 0x1d0   : > { %1794 = vmatmul.msk.f32.gmra.mxu2 %vm1215_vm1, %v1194_v13 }
 0x1d3   : > { %v1332_v20 = vpop.f32.mrf.mxu2 }
 0x1d4   : > { %v1333_v15 = vadd.f32 %v2503_v25, %v1332_v20 }
 0x1d5   : > { %v1155_v47 = vpop.permute.xlu2 %1154  ;;  %v1110_v18 = vpop.permute.xlu0 %1109 }
 0x1d6   : > { %v1204_v19 = vmul.f32 %v1155_v47, %v2440_v61  ;;  %v1195_v22 = vmul.f32 %v1110_v18, %v2424_v28  ;;  %1427 = vst.msk [vmem:[%s2508_s12 + $0x8] sm:$0xff] %vm1425_vm2, %v1333_v15 }
 0x1d8   : > { %1804 = vmatmul.msk.f32.vlgmr.msra.gmra.mxu3 %vm1215_vm1, %v1204_v19  ;;  %1795 = vmatmul.msk.f32.gmra.mxu2 %vm1215_vm1, %v1195_v22 }
 0x1db   : > { %v1335_v16 = vpop.f32.mrf.mxu2 }
 0x1dc   : > { %v1336_v23 = vadd.f32 %v2503_v25, %v1335_v16 }
 0x1dd   : > { %v1115_v24 = vpop.permute.xlu1 %1114 }
 0x1de   : > { %v1196_v26 = vmul.f32 %v1115_v24, %v2430_v38  ;;  %1428 = vst.msk [vmem:[%s2508_s12 + $0x10] sm:$0xff] %vm1425_vm2, %v1336_v23 }
 0x1e0   : > { %1796 = vmatmul.msk.f32.gmra.mxu2 %vm1215_vm1, %v1196_v26 }
 0x1e3   : > { %v1338_v61 = vpop.f32.mrf.mxu2 }
 0x1e4   : > { %v1339_v28 = vadd.f32 %v2503_v25, %v1338_v61 }
 0x1e6   : > { %1429 = vst.msk [vmem:[%s2508_s12 + $0x18] sm:$0xff] %vm1425_vm2, %v1339_v28 }
 0x1e8   : > { %1797 = vmatmul.msk.f32.gmra.mxu2 %vm1215_vm1, %v1197_v57 }
 0x1eb   : > { %v1341_v29 = vpop.f32.mrf.mxu2 }
 0x1ec   : > { %v1342_v31 = vadd.f32 %v2503_v25, %v1341_v29 }
 0x1ed   : > { %v1125_v33 = vpop.permute.xlu0 %1124 }
 0x1ee   : > { %v1198_v38 = vmul.f32 %v1125_v33, %v2445_v3  ;;  %1430 = vst.msk [vmem:[%s2508_s12 + $0x20] sm:$0xff] %vm1425_vm2, %v1342_v31 }
 0x1f0   : > { %1798 = vmatmul.msk.f32.gmra.mxu2 %vm1215_vm1, %v1198_v38 }
 0x1f3   : > { %v1344_v34 = vpop.f32.mrf.mxu2 }
 0x1f4   : > { %v1345_v35 = vadd.f32 %v2503_v25, %v1344_v34 }
 0x1f5   : > { %v1130_v51 = vpop.permute.xlu1 %1129 }
 0x1f6   : > { %v1199_v52 = vmul.f32 %v1130_v51, %v2454_v21  ;;  %1431 = vst.msk [vmem:[%s2508_s12 + $0x28] sm:$0xff] %vm1425_vm2, %v1345_v35  ;;  %v1140_v21 = vpop.permute.xlu2 %1139 }
 0x1f7   : > { %v1201_v17 = vmul.f32 %v1140_v21, %v2449_v8 }
 0x1f8   : > { %1799 = vmatmul.msk.f32.gmra.mxu2 %vm1215_vm1, %v1199_v52 }
 0x1fb   : > { %v1347_v6 = vpop.f32.mrf.mxu2 }
 0x1fc   : > { %v1348_v40 = vadd.f32 %v2503_v25, %v1347_v6 }
 0x1fd   : > { %v1160_v43 = vpop.permute.xlu1 %1159 }
 0x1fe   : > { %v1205_v3 = vmul.f32 %v1160_v43, %v2458_v37  ;;  %v1135_v44 = vpop.permute.xlu0 %1134  ;;  %1432 = vst.msk [vmem:[%s2508_s12 + $0x30] sm:$0xff] %vm1425_vm2, %v1348_v40 }
 0x1ff   : > { %v1200_v46 = vmul.f32 %v1135_v44, %v2466_v32  ;;  %v1170_v32 = vpop.permute.xlu2 %1169 }
 0x200   : > { %1805 = vmatmul.msk.f32.gmra.mxu3 %vm1215_vm1, %v1205_v3  ;;  %v1207_v62 = vmul.f32 %v1170_v32, %v2460_v53 }
 0x201   : > { %1800 = vmatmul.msk.f32.gmra.mxu2 %vm1215_vm1, %v1200_v46 }
 0x203   : > { %v1350_v48 = vpop.f32.mrf.mxu2 }
 0x204   : > { %v1351_v50 = vadd.f32 %v2503_v25, %v1350_v48 }
 0x205   : > { %v1145_v60 = vpop.permute.xlu1 %1144 }
 0x206   : > { %v1165_v45 = vpop.permute.xlu0 %1164  ;;  %1433 = vst.msk [vmem:[%s2508_s12 + $0x38] sm:$0xff] %vm1425_vm2, %v1351_v50  ;;  %v1202_v27 = vmul.f32 %v1145_v60, %v2469_v36 }
 0x207   : > { %v1206_v37 = vmul.f32 %v1165_v45, %v2471_v0 }
 0x209   : > { %1801 = vmatmul.msk.f32.gmra.mxu2 %vm1215_vm1, %v1201_v17  ;;  %1806 = vmatmul.msk.f32.gmra.mxu3 %vm1215_vm1, %v1206_v37 }
 0x20b   : > { %v1353_v54 = vpop.f32.mrf.mxu2 }
 0x20c   : > { %v1354_v58 = vadd.f32 %v2503_v25, %v1353_v54 }
 0x20d   : > { %v1175_v8 = vpop.permute.xlu1 %1174 }
 0x20e   : > { %1434 = vst.msk [vmem:[%s2508_s12 + $0x40] sm:$0xff] %vm1425_vm2, %v1354_v58  ;;  %v1150_v0 = vpop.permute.xlu0 %1149  ;;  %v1208_v11 = vmul.f32 %v1175_v8, %v2477_v49 }
 0x20f   : > { %v1203_v53 = vmul.f32 %v1150_v0, %v2480_v14 }
 0x211   : > { %1802 = vmatmul.msk.f32.gmra.mxu2 %vm1215_vm1, %v1202_v27  ;;  %1807 = vmatmul.msk.f32.gmra.mxu3 %vm1215_vm1, %v1207_v62 }
 0x213   : > { %v1356_v63 = vpop.f32.mrf.mxu2 }
 0x214   : > { %v1357_v1 = vadd.f32 %v2503_v25, %v1356_v63 }
 0x216   : > { %1435 = vst.msk [vmem:[%s2508_s12 + $0x48] sm:$0xff] %vm1425_vm2, %v1357_v1 }
 0x219   : > { %1803 = vmatmul.msk.f32.gmra.mxu2 %vm1215_vm1, %v1203_v53  ;;  %1808 = vmatmul.msk.f32.gmra.mxu3 %vm1215_vm1, %v1208_v11 }
 0x21b   : > { %v1359_v36 = vpop.f32.mrf.mxu2 }
 0x21c   : > { %v1360_v30 = vadd.f32 %v2503_v25, %v1359_v36 }
 0x21e   : > { %1436 = vst.msk [vmem:[%s2508_s12 + $0x50] sm:$0xff] %vm1425_vm2, %v1360_v30 }
 0x223   : > { %v1362_v2 = vpop.f32.mrf.mxu2 }
 0x224   : > { %v1363_v56 = vadd.f32 %v2503_v25, %v1362_v2 }
 0x226   : > { %1437 = vst.msk [vmem:[%s2508_s12 + $0x58] sm:$0xff] %vm1425_vm2, %v1363_v56 }
 0x22b   : > { %v1365_v49 = vpop.f32.mrf.mxu2 }
 0x22c   : > { %v1366_v14 = vadd.f32 %v2503_v25, %v1365_v49 }
 0x22e   : > { %1438 = vst.msk [vmem:[%s2508_s12 + $0x60] sm:$0xff] %vm1425_vm2, %v1366_v14 }
 0x233   : > { %v1368_v41 = vpop.f32.mrf.mxu2 }
 0x234   : > { %v1369_v5 = vadd.f32 %v2503_v25, %v1368_v41 }
 0x236   : > { %1439 = vst.msk [vmem:[%s2508_s12 + $0x68] sm:$0xff] %vm1425_vm2, %v1369_v5 }
 0x23b   : > { %v1371_v7 = vpop.f32.mrf.mxu2 }
 0x23c   : > { %v1372_v9 = vadd.f32 %v2503_v25, %v1371_v7 }
 0x23e   : > { %1440 = vst.msk [vmem:[%s2508_s12 + $0x70] sm:$0xff] %vm1425_vm2, %v1372_v9 }
 0x243   : > { %v1374_v59 = vpop.f32.mrf.mxu2 }
 0x244   : > { %v1375_v10 = vadd.f32 %v2503_v25, %v1374_v59 }
 0x246   : > { %1441 = vst.msk [vmem:[%s2508_s12 + $0x78] sm:$0xff] %vm1425_vm2, %v1375_v10 }
 0x24b   : > { %v1377_v42 = vpop.f32.mrf.mxu2 }
 0x24c   : > { %v1378_v12 = vadd.f32 %v2503_v25, %v1377_v42 }
 0x24e   : > { %1442 = vst.msk [vmem:[%s2508_s12 + $0x80] sm:$0xff] %vm1425_vm2, %v1378_v12 }
 0x253   : > { %v1380_v39 = vpop.f32.mrf.mxu2 }
 0x254   : > { %v1381_v55 = vadd.f32 %v2503_v25, %v1380_v39 }
 0x256   : > { %1443 = vst.msk [vmem:[%s2508_s12 + $0x88] sm:$0xff] %vm1425_vm2, %v1381_v55 }
 0x25b   : > { %v1410_v4 = vpop.f32.mrf.mxu3  ;;  %v1383_v13 = vpop.f32.mrf.mxu2 }
 0x25c   : > { %v1411_v20 = vadd.f32 %v2503_v25, %v1410_v4  ;;  %v1384_v15 = vadd.f32 %v2503_v25, %v1383_v13 }
 0x25e   : > { %1453 = vst.msk [vmem:[%s2508_s12 + $0xd8] sm:$0xff] %vm1425_vm2, %v1411_v20 }
 0x25f   : > { %1444 = vst.msk [vmem:[%s2508_s12 + $0x90] sm:$0xff] %vm1425_vm2, %v1384_v15 }
 0x263   : > { %v1386_v47 = vpop.f32.mrf.mxu2 }
 0x264   : > { %v1387_v18 = vadd.f32 %v2503_v25, %v1386_v47 }
 0x266   : > { %1445 = vst.msk [vmem:[%s2508_s12 + $0x98] sm:$0xff] %vm1425_vm2, %v1387_v18 }
 0x26b   : > { %v1389_v19 = vpop.f32.mrf.mxu2 }
 0x26c   : > { %v1390_v22 = vadd.f32 %v2503_v25, %v1389_v19 }
 0x26e   : > { %1446 = vst.msk [vmem:[%s2508_s12 + $0xa0] sm:$0xff] %vm1425_vm2, %v1390_v22 }
 0x273   : > { %v1392_v16 = vpop.f32.mrf.mxu2 }
 0x274   : > { %v1393_v23 = vadd.f32 %v2503_v25, %v1392_v16 }
 0x276   : > { %1447 = vst.msk [vmem:[%s2508_s12 + $0xa8] sm:$0xff] %vm1425_vm2, %v1393_v23 }
 0x27b   : > { %v1395_v24 = vpop.f32.mrf.mxu2 }
 0x27c   : > { %v1396_v26 = vadd.f32 %v2503_v25, %v1395_v24 }
 0x27e   : > { %1448 = vst.msk [vmem:[%s2508_s12 + $0xb0] sm:$0xff] %vm1425_vm2, %v1396_v26 }
 0x283   : > { %v1413_v61 = vpop.f32.mrf.mxu3 }
 0x284   : > { %v1398_v28 = vpop.f32.mrf.mxu2  ;;  %v1414_v57 = vadd.f32 %v2503_v25, %v1413_v61 }
 0x285   : > { %v1399_v29 = vadd.f32 %v2503_v25, %v1398_v28 }
 0x286   : > { %1454 = vst.msk [vmem:[%s2508_s12 + $0xe0] sm:$0xff] %vm1425_vm2, %v1414_v57 }
 0x287   : > { %1449 = vst.msk [vmem:[%s2508_s12 + $0xb8] sm:$0xff] %vm1425_vm2, %v1399_v29 }
 0x28c   : > { %v1401_v31 = vpop.f32.mrf.mxu2  ;;  %v1416_v33 = vpop.f32.mrf.mxu3 }
 0x28d   : > { %v1402_v38 = vadd.f32 %v2503_v25, %v1401_v31  ;;  %v1417_v34 = vadd.f32 %v2503_v25, %v1416_v33 }
 0x28f   : > { %1450 = vst.msk [vmem:[%s2508_s12 + $0xc0] sm:$0xff] %vm1425_vm2, %v1402_v38 }
 0x290   : > { %1455 = vst.msk [vmem:[%s2508_s12 + $0xe8] sm:$0xff] %vm1425_vm2, %v1417_v34 }
 0x294   : > { %v1404_v35 = vpop.f32.mrf.mxu2  ;;  %v1419_v51 = vpop.f32.mrf.mxu3 }
 0x295   : > { %v1405_v52 = vadd.f32 %v2503_v25, %v1404_v35  ;;  %v1420_v6 = vadd.f32 %v2503_v25, %v1419_v51 }
 0x297   : > { %1451 = vst.msk [vmem:[%s2508_s12 + $0xc8] sm:$0xff] %vm1425_vm2, %v1405_v52 }
 0x298   : > { %1456 = vst.msk [vmem:[%s2508_s12 + $0xf0] sm:$0xff] %vm1425_vm2, %v1420_v6 }
 0x29c   : > { %v1407_v40 = vpop.f32.mrf.mxu2  ;;  %v1422_v43 = vpop.f32.mrf.mxu3 }
 0x29d   : > { %v1408_v3 = vadd.f32 %v2503_v25, %v1407_v40  ;;  %v1423_v44 = vadd.f32 %v2503_v25, %v1422_v43 }
 0x29f   : > { %1452 = vst.msk [vmem:[%s2508_s12 + $0xd0] sm:$0xff] %vm1425_vm2, %v1408_v3 }
 0x2a0   : > { %1457 = vst.msk [vmem:[%s2508_s12 + $0xf8] sm:$0xff] %vm1425_vm2, %v1423_v44 }
 0x2a1 PF: > { %s17_s20 = sadd.s32 1, %s2087_s20   ;;  %s2661_s15 = smov %s2071_s16 }
 0x2a2   : > { %p14_p0 = scmp.ge.s32.totalorder %s17_s20, 4   ;;  %s2662_s16 = smov %s2075_s17 }
 0x2a3   : > { %s2663_s17 = smov %s2167_s27  ;;  %s2664_s18 = smov %s2083_s19 }
 0x2a4   : > { %s2665_s19 = smov %s2667_s22  ;;  %16 = sbr.rel (!%p14_p0) target bundleno = 4 (0x4), region = 88 }
 0x2a9   :  { %1488 = vsyncpa [#allocation4], 1 }
 0x2aa   :  { %1490 = vsyncpa [#allocation4 + $0x1], 1 }

</bundles_post_ra>
